<compile_context>
chip_gen: v5e
topology: v5e:2x2
jax: 0.10.0
libtpu: 0.0.40
codegen_flags: <defaults>
</compile_context>

<pallas_src>
import jax
import jax.numpy as jnp
from jax.experimental import pallas as pl
from jax.experimental.pallas import tpu as pltpu


def _round_up(x, m):
    return (x + m - 1) // m * m


# ----------------------------------------------------------------------------
# Fused Pallas kernel:
#   o = (p @ wc + bc) @ wp + bp      (f32 accumulation on the MXU)
# p:  (tm, Kc)   row tile of im2col patches
# wc: (Kc, F)    conv weight as matrix (resident)
# bc: (1, F)     conv bias
# wp: (F, Np)    projection weight (transposed, padded to lane-dense Np)
# bp: (1, Np)    projection bias (padded)
# o:  (tm, Np)   lane-dense output tile
# ----------------------------------------------------------------------------
def _fused_embed_kernel(p_ref, wc_ref, bc_ref, wp_ref, bp_ref, o_ref):
    feats = jnp.dot(p_ref[...], wc_ref[...], preferred_element_type=jnp.float32)
    feats = feats + bc_ref[...]          # stays in VMEM/vregs, never hits HBM
    out = jnp.dot(feats, wp_ref[...], preferred_element_type=jnp.float32)
    o_ref[...] = (out + bp_ref[...]).astype(o_ref.dtype)


def _pick_tm(M):
    # Whole-M single tile when small; otherwise 256-row tiles (feeds the
    # 128/256-wide MXUs on v5e/v6e/v7x and keeps per-step overhead amortized).
    if M <= 512:
        return _round_up(M, 128)
    return 256


# ----------------------------------------------------------------------------
# HybridEmbed forward
# ----------------------------------------------------------------------------
def hybrid_embed_forward(x, params, *, tm=None):
    """x: (B, C, H, W) f32 NCHW.  Returns (B, num_patches, embed_dim) f32."""
    w_conv = params["backbone_conv_w"]   # (feature_dim, in_chans, k, k) (PyTorch conv layout)
    b_conv = params["backbone_conv_b"]   # (feature_dim,)
    w_proj = params["proj_w"]            # (embed_dim, feature_dim)      (PyTorch Linear layout)
    b_proj = params["proj_b"]            # (embed_dim,)

    B, C, H, W = x.shape
    F, Cw, k, _ = w_conv.shape
    E = w_proj.shape[0]
    assert Cw == C and H % k == 0 and W % k == 0
    Hf, Wf = H // k, W // k
    M = B * Hf * Wf
    Kc = C * k * k

    # --- backbone(x)[-1]: stride-k conv via im2col -------------------------
    # (B, C, Hf, k, Wf, k) -> (B, Hf, Wf, C, k, k) -> (M, C*k*k)
    # TODO(synk): move patchification into the kernel's input DMA (grid over
    # (b, hf) with a (1, C, k, W) block) to avoid materializing the patch
    # matrix in HBM for large images; kept as XLA glue here.
    patches = x.reshape(B, C, Hf, k, Wf, k)
    patches = jnp.transpose(patches, (0, 2, 4, 1, 3, 5)).reshape(M, Kc)

    # --- tiling / padding ----------------------------------------------------
    if tm is None:
        tm = _pick_tm(M)
    M_pad = _round_up(M, tm)
    N_pad = _round_up(E, 128)            # lane-dense output stores

    if M_pad != M:
        patches = jnp.pad(patches, ((0, M_pad - M), (0, 0)))

    w_conv_mat = w_conv.reshape(F, Kc).T             # (Kc, F)
    wp = w_proj.T                                    # (F, E)
    bp = b_proj
    if N_pad != E:
        wp = jnp.pad(wp, ((0, 0), (0, N_pad - E)))
        bp = jnp.pad(bp, (0, N_pad - E))

    out = pl.pallas_call(
        _fused_embed_kernel,
        out_shape=jax.ShapeDtypeStruct((M_pad, N_pad), jnp.float32),
        grid_spec=pltpu.PrefetchScalarGridSpec(
            num_scalar_prefetch=0,
            grid=(M_pad // tm,),
            in_specs=[
                pl.BlockSpec((tm, Kc), lambda i: (i, 0)),    # row tile of patches
                pl.BlockSpec((Kc, F), lambda i: (0, 0)),     # conv weight, resident
                pl.BlockSpec((1, F), lambda i: (0, 0)),      # conv bias row
                pl.BlockSpec((F, N_pad), lambda i: (0, 0)),  # proj weight, resident
                pl.BlockSpec((1, N_pad), lambda i: (0, 0)),  # proj bias row
            ],
            out_specs=pl.BlockSpec((tm, N_pad), lambda i: (i, 0)),
        ),
        compiler_params=pltpu.CompilerParams(
            dimension_semantics=("parallel",)),
    )(patches, w_conv_mat, b_conv.reshape(1, F), wp, bp.reshape(1, N_pad))

    # Strip M/N padding (no-op slices when shapes are already tile-aligned)
    # and reshape to (B, num_patches, embed_dim) == flatten(2).transpose(1,2) + proj.
    return out[:M, :E].reshape(B, Hf * Wf, E)


# Pure-JAX reference for verification.
def hybrid_embed_ref(x, params):
    w_conv = params["backbone_conv_w"]
    b_conv = params["backbone_conv_b"]
    w_proj = params["proj_w"]
    b_proj = params["proj_b"]
    k = w_conv.shape[-1]
    feats = jax.lax.conv_general_dilated(
        x, w_conv, window_strides=(k, k), padding="VALID",
        dimension_numbers=("NCHW", "OIHW", "NCHW")) + b_conv[None, :, None, None]
    B, F, Hf, Wf = feats.shape
    tok = jnp.transpose(feats.reshape(B, F, Hf * Wf), (0, 2, 1))
    return tok @ w_proj.T + b_proj


if __name__ == "__main__":
    # Small shapes consistent with the module's forward.
    B, in_chans, img_size = 2, 4, 16
    patch = 4                 # synthetic backbone stride / kernel
    feature_dim = 32          # backbone output channels
    embed_dim = 64

    key = jax.random.PRNGKey(0)
    kx, k1, k2, k3, k4 = jax.random.split(key, 5)

    x = jax.random.normal(kx, (B, in_chans, img_size, img_size), dtype=jnp.float32)

    params = {
        # TODO(synk): the real backbone is an arbitrary nn.Module; here it is a
        # single deterministic stride-4 conv standing in for backbone(x)[-1].
        "backbone_conv_w": 0.05 * jax.random.normal(
            k1, (feature_dim, in_chans, patch, patch), dtype=jnp.float32),
        "backbone_conv_b": 0.01 * jax.random.normal(k2, (feature_dim,), dtype=jnp.float32),
        "proj_w": 0.05 * jax.random.normal(k3, (embed_dim, feature_dim), dtype=jnp.float32),
        "proj_b": 0.01 * jax.random.normal(k4, (embed_dim,), dtype=jnp.float32),
    }

    out = hybrid_embed_forward(x, params)
    out = jax.block_until_ready(out)

    ref = hybrid_embed_ref(x, params)
    assert out.shape == (B, (img_size // patch) ** 2, embed_dim), out.shape
    assert jnp.allclose(out, ref, atol=1e-3, rtol=1e-3), float(jnp.max(jnp.abs(out - ref)))

    print("KERNEL_OK")
</pallas_src>

<mosaic_0001>
module attributes {stable_mosaic.version = 11 : i64} {
  func.func @_fused_embed_kernel(%arg0: i32, %arg1: memref<128x64xf32, #tpu.memory_space<vmem>>, %arg2: memref<64x32xf32, #tpu.memory_space<vmem>>, %arg3: memref<1x32xf32, #tpu.memory_space<vmem>>, %arg4: memref<32x128xf32, #tpu.memory_space<vmem>>, %arg5: memref<1x128xf32, #tpu.memory_space<vmem>>, %arg6: memref<128x128xf32, #tpu.memory_space<vmem>>) attributes {dimension_semantics = [#tpu.dimension_semantics<parallel>], iteration_bounds = array<i64: 1>, scalar_prefetch = 0 : i64, scratch_operands = 0 : i64, tpu.core_type = #tpu.core_type<tc>, window_params = [{transform_indices = @transform_0, window_bounds = array<i64: 128, 64>}, {pipeline_mode = #tpu.pipeline_mode<synchronous>, transform_indices = @transform_1, window_bounds = array<i64: 64, 32>}, {pipeline_mode = #tpu.pipeline_mode<synchronous>, transform_indices = @transform_2, window_bounds = array<i64: 1, 32>}, {pipeline_mode = #tpu.pipeline_mode<synchronous>, transform_indices = @transform_3, window_bounds = array<i64: 32, 128>}, {pipeline_mode = #tpu.pipeline_mode<synchronous>, transform_indices = @transform_4, window_bounds = array<i64: 1, 128>}, {transform_indices = @transform_5, window_bounds = array<i64: 128, 128>}]} {
    %c0 = arith.constant 0 : index
    %c0_0 = arith.constant 0 : index
    %0 = vector.load %arg1[%c0, %c0_0] : memref<128x64xf32, #tpu.memory_space<vmem>>, vector<128x64xf32>
    %c0_1 = arith.constant 0 : index
    %c0_2 = arith.constant 0 : index
    %1 = vector.load %arg2[%c0_1, %c0_2] : memref<64x32xf32, #tpu.memory_space<vmem>>, vector<64x32xf32>
    %cst = arith.constant dense<0.000000e+00> : vector<128x32xf32>
    %2 = tpu.matmul %0, %1, %cst {dimension_numbers = #tpu.dot_dimension_numbers<[1], [0], [0], [1], [0, 0, 1, 1], [], []>} : vector<128x64xf32>, vector<64x32xf32>, vector<128x32xf32> -> vector<128x32xf32>
    %c0_3 = arith.constant 0 : index
    %c0_4 = arith.constant 0 : index
    %3 = vector.load %arg3[%c0_3, %c0_4] : memref<1x32xf32, #tpu.memory_space<vmem>>, vector<1x32xf32>
    %4 = vector.broadcast %3 : vector<1x32xf32> to vector<128x32xf32>
    %5 = arith.addf %2, %4 : vector<128x32xf32>
    %c0_5 = arith.constant 0 : index
    %c0_6 = arith.constant 0 : index
    %6 = vector.load %arg4[%c0_5, %c0_6] : memref<32x128xf32, #tpu.memory_space<vmem>>, vector<32x128xf32>
    %cst_7 = arith.constant dense<0.000000e+00> : vector<128x128xf32>
    %7 = tpu.matmul %5, %6, %cst_7 {dimension_numbers = #tpu.dot_dimension_numbers<[1], [0], [0], [1], [0, 0, 1, 1], [], []>} : vector<128x32xf32>, vector<32x128xf32>, vector<128x128xf32> -> vector<128x128xf32>
    %c0_8 = arith.constant 0 : index
    %c0_9 = arith.constant 0 : index
    %8 = vector.load %arg5[%c0_8, %c0_9] : memref<1x128xf32, #tpu.memory_space<vmem>>, vector<1x128xf32>
    %9 = vector.broadcast %8 : vector<1x128xf32> to vector<128x128xf32>
    %10 = arith.addf %7, %9 : vector<128x128xf32>
    %c0_10 = arith.constant 0 : index
    %c0_11 = arith.constant 0 : index
    %11 = vector.load %arg6[%c0_10, %c0_11] : memref<128x128xf32, #tpu.memory_space<vmem>>, vector<128x128xf32>
    tpu.vector_store %arg6[%c0_10, %c0_11], %10 {strides = array<i32>} : memref<128x128xf32, #tpu.memory_space<vmem>>, vector<128x128xf32>,
    return
  }
  func.func @transform_0(%arg0: i32) -> (i32, i32) {
    %c0_i32 = arith.constant 0 : i32
    %c0_i32_0 = arith.constant 0 : i32
    return %arg0, %c0_i32 : i32, i32
  }
  func.func @transform_1(%arg0: i32) -> (i32, i32) {
    %c0_i32 = arith.constant 0 : i32
    %c0_i32_0 = arith.constant 0 : i32
    %c0_i32_1 = arith.constant 0 : i32
    return %c0_i32, %c0_i32_0 : i32, i32
  }
  func.func @transform_2(%arg0: i32) -> (i32, i32) {
    %c0_i32 = arith.constant 0 : i32
    %c0_i32_0 = arith.constant 0 : i32
    %c0_i32_1 = arith.constant 0 : i32
    return %c0_i32, %c0_i32_0 : i32, i32
  }
  func.func @transform_3(%arg0: i32) -> (i32, i32) {
    %c0_i32 = arith.constant 0 : i32
    %c0_i32_0 = arith.constant 0 : i32
    %c0_i32_1 = arith.constant 0 : i32
    return %c0_i32, %c0_i32_0 : i32, i32
  }
  func.func @transform_4(%arg0: i32) -> (i32, i32) {
    %c0_i32 = arith.constant 0 : i32
    %c0_i32_0 = arith.constant 0 : i32
    %c0_i32_1 = arith.constant 0 : i32
    return %c0_i32, %c0_i32_0 : i32, i32
  }
  func.func @transform_5(%arg0: i32) -> (i32, i32) {
    %c0_i32 = arith.constant 0 : i32
    %c0_i32_0 = arith.constant 0 : i32
    return %arg0, %c0_i32 : i32, i32
  }
}

</mosaic_0001>

<bundles_post_ra>
// kernel: tpu_custom_call.1
= control target key start
LH: loop header
LB: loop body
LE: loop exit
PB: predicated region body
PF: predicated region fallthrough
CT: control target
= control target key end

     0   :  { %s552_s0 = inlined_call_operand.vmem [shape: f32[128,64], index: 0, kind: input, shape index: {}]   ;;  %s553_s1 = inlined_call_operand.vmem [shape: f32[64,32], index: 1, kind: input, shape index: {}]   ;;  %s554_s2 = inlined_call_operand.vmem [shape: f32[1,32], index: 2, kind: input, shape index: {}]   ;;  %s555_s3 = inlined_call_operand.vmem [shape: f32[32,128], index: 3, kind: input, shape index: {}]   ;;  %s556_s4 = inlined_call_operand.vmem [shape: f32[1,128], index: 4, kind: input, shape index: {}]   ;;  %s557_s5 = inlined_call_operand.hbm [shape: f32[128,128], index: 5, kind: output, shape index: {}]  }
   0x1   :  { %v44_v0 = vld [vmem:[%s553_s1 + $0x38] sm:$0xff]  ;;  %v43_v1 = vld [vmem:[%s553_s1 + $0x30] sm:$0xff]  ;;  %v42_v2 = vld [vmem:[%s553_s1 + $0x28] sm:$0xff] }
   0x2   :  { %106 = vmatpush.msra.mxu0 %v44_v0  ;;  %351 = vmatpush.msra.mxu2 %v44_v0  ;;  %v41_v3 = vld [vmem:[%s553_s1 + $0x20] sm:$0xff] }
   0x4   :  { %107 = vmatpush.msra.mxu0 %v43_v1  ;;  %352 = vmatpush.msra.mxu2 %v43_v1 }
   0x6   :  { %108 = vmatpush.msra.mxu0 %v42_v2  ;;  %353 = vmatpush.msra.mxu2 %v42_v2 }
   0x7   :  { %10 = vsyncpa [#allocation3], 0  ;;  %v40_v4 = vld [vmem:[%s553_s1 + $0x18] sm:$0xff]  ;;  %v39_v5 = vld [vmem:[%s553_s1 + $0x10] sm:$0xff]  ;;  %vm49_vm0 = vcmask 523264   ;;  %vm171_vm1 = vcmask 261120  }
   0x8   :  { %109 = vmatpush.msra.mxu0 %v41_v3  ;;  %354 = vmatpush.msra.mxu2 %v41_v3  ;;  %v38_v6 = vld [vmem:[%s553_s1 + $0x8] sm:$0xff]  ;;  %v37_v7 = vld [vmem:[%s553_s1] sm:$0xff]  ;;  %v23_v12 = vld [vmem:[%s552_s0 + $0x10] sm:$0xff]  ;;  %s307_s26 = sshll.u32 %s557_s5, 4  ;;  %s395_s27 = smov 128   ;;  %s308_s26 = int_to_ptr.hbm [resolvable:$true] %s307_s26 }
   0x9   :  { %v21_v8 = vld [vmem:[%s552_s0] sm:$0xff]  ;;  %v22_v10 = vld [vmem:[%s552_s0 + $0x8] sm:$0xff]  ;;  %v31_v13 = vld [vmem:[%s552_s0 + $0x50] sm:$0xff]  ;;  %s396_s28 = smov 8  }
   0xa   :  { %110 = vmatpush.msra.mxu0 %v40_v4  ;;  %355 = vmatpush.msra.mxu2 %v40_v4  ;;  %v29_v9 = vld [vmem:[%s552_s0 + $0x40] sm:$0xff]  ;;  %v30_v11 = vld [vmem:[%s552_s0 + $0x48] sm:$0xff]  ;;  %v24_v14 = vld [vmem:[%s552_s0 + $0x18] sm:$0xff] }
   0xb   :  { %v32_v15 = vld [vmem:[%s552_s0 + $0x58] sm:$0xff]  ;;  %v165_v17 = vld [vmem:[%s555_s3 + $0x10] sm:$0xff]  ;;  %v25_v18 = vld [vmem:[%s552_s0 + $0x20] sm:$0xff] }
   0xc   :  { %111 = vmatpush.msra.mxu0 %v39_v5  ;;  %356 = vmatpush.msra.mxu2 %v39_v5  ;;  %v166_v16 = vld [vmem:[%s555_s3 + $0x18] sm:$0xff]  ;;  %v33_v19 = vld [vmem:[%s552_s0 + $0x60] sm:$0xff]  ;;  %v26_v20 = vld [vmem:[%s552_s0 + $0x28] sm:$0xff] }
   0xd   :  { %232 = vmatpush.msra.mxu1 %v166_v16  ;;  %359 = vmatpush.msra.mxu3 %v166_v16  ;;  %v34_v21 = vld [vmem:[%s552_s0 + $0x68] sm:$0xff]  ;;  %v27_v22 = vld [vmem:[%s552_s0 + $0x30] sm:$0xff]  ;;  %v28_v24 = vld [vmem:[%s552_s0 + $0x38] sm:$0xff] }
   0xe   :  { %112 = vmatpush.msra.mxu0 %v38_v6  ;;  %357 = vmatpush.msra.mxu2 %v38_v6  ;;  %v35_v23 = vld [vmem:[%s552_s0 + $0x70] sm:$0xff]  ;;  %v36_v25 = vld [vmem:[%s552_s0 + $0x78] sm:$0xff]  ;;  %v164_v26 = vld [vmem:[%s555_s3 + $0x8] sm:$0xff] }
   0xf   :  { %233 = vmatpush.msra.mxu1 %v165_v17  ;;  %360 = vmatpush.msra.mxu3 %v165_v17  ;;  %v163_v27 = vld [vmem:[%s555_s3] sm:$0xff]  ;;  %s394_s3 = smov [#allocation2]  }
  0x10   :  { %113 = vmatpush.msra.mxu0 %v37_v7  ;;  %358 = vmatpush.msra.mxu2 %v37_v7  ;;  %v366_v28 = vld [vmem:[%s554_s2] ss:$0 sm:$0xff] }
  0x11   :  { %319 = vmatmul.msk.f32.vlgmr.msra.gmra.mxu0 %vm49_vm0, %v21_v8  ;;  %327 = vmatmul.msk.f32.vlgmr.msra.gmra.mxu2 %vm49_vm0, %v29_v9  ;;  %v367_v61 = vld [vmem:[%s556_s4] ss:$0 sm:$0xff]  ;;  %s305_s4 = sshll.u32 %s394_s3, 4  ;;  %s306_s4 = int_to_ptr.vmem [resolvable:$true] %s305_s4 }
  0x12   :  { %234 = vmatpush.msra.mxu1 %v164_v26  ;;  %361 = vmatpush.msra.mxu3 %v164_v26 }
  0x14   :  { %235 = vmatpush.msra.mxu1 %v163_v27  ;;  %362 = vmatpush.msra.mxu3 %v163_v27 }
  0x19   :  { %320 = vmatmul.msk.f32.gmra.mxu0 %vm49_vm0, %v22_v10  ;;  %328 = vmatmul.msk.f32.gmra.mxu2 %vm49_vm0, %v30_v11 }
  0x21   :  { %321 = vmatmul.msk.f32.gmra.mxu0 %vm49_vm0, %v23_v12  ;;  %329 = vmatmul.msk.f32.gmra.mxu2 %vm49_vm0, %v31_v13 }
  0x29   :  { %322 = vmatmul.msk.f32.gmra.mxu0 %vm49_vm0, %v24_v14  ;;  %330 = vmatmul.msk.f32.gmra.mxu2 %vm49_vm0, %v32_v15 }
  0x31   :  { %323 = vmatmul.msk.f32.gmra.mxu0 %vm49_vm0, %v25_v18  ;;  %331 = vmatmul.msk.f32.gmra.mxu2 %vm49_vm0, %v33_v19 }
  0x39   :  { %324 = vmatmul.msk.f32.gmra.mxu0 %vm49_vm0, %v26_v20  ;;  %332 = vmatmul.msk.f32.gmra.mxu2 %vm49_vm0, %v34_v21 }
  0x41   :  { %325 = vmatmul.msk.f32.gmra.mxu0 %vm49_vm0, %v27_v22  ;;  %333 = vmatmul.msk.f32.gmra.mxu2 %vm49_vm0, %v35_v23 }
  0x49   :  { %326 = vmatmul.msk.f32.gmra.mxu0 %vm49_vm0, %v28_v24  ;;  %334 = vmatmul.msk.f32.gmra.mxu2 %vm49_vm0, %v36_v25 }
  0x8e   :  { %v115_v29 = vpop.f32.mrf.mxu0 }
  0x8f   :  { %v116_v30 = vadd.f32 %v366_v28, %v115_v29 }
  0x91   :  { %335 = vmatmul.msk.f32.vlgmr.msra.gmra.mxu1 %vm171_vm1, %v116_v30 }
  0x94   :  { %v139_v31 = vpop.f32.mrf.mxu2 }
  0x95   :  { %v140_v60 = vadd.f32 %v366_v28, %v139_v31 }
  0x96   :  { %v118_v32 = vpop.f32.mrf.mxu0 }
  0x97   :  { %v119_v33 = vadd.f32 %v366_v28, %v118_v32 }
  0x99   :  { %336 = vmatmul.msk.f32.gmra.mxu1 %vm171_vm1, %v119_v33 }
  0x9c   :  { %v142_v34 = vpop.f32.mrf.mxu2 }
  0x9d   :  { %v143_v35 = vadd.f32 %v366_v28, %v142_v34 }
  0x9e   :  { %v121_v36 = vpop.f32.mrf.mxu0 }
  0x9f   :  { %v122_v37 = vadd.f32 %v366_v28, %v121_v36  ;;  %344 = vmatmul.msk.f32.vlgmr.msra.gmra.mxu3 %vm171_vm1, %v143_v35 }
  0xa1   :  { %337 = vmatmul.msk.f32.gmra.mxu1 %vm171_vm1, %v122_v37 }
  0xa4   :  { %v145_v38 = vpop.f32.mrf.mxu2 }
  0xa5   :  { %v146_v39 = vadd.f32 %v366_v28, %v145_v38 }
  0xa6   :  { %v124_v40 = vpop.f32.mrf.mxu0 }
  0xa7   :  { %v125_v41 = vadd.f32 %v366_v28, %v124_v40  ;;  %345 = vmatmul.msk.f32.gmra.mxu3 %vm171_vm1, %v146_v39 }
  0xa9   :  { %338 = vmatmul.msk.f32.gmra.mxu1 %vm171_vm1, %v125_v41 }
  0xac   :  { %v148_v42 = vpop.f32.mrf.mxu2 }
  0xad   :  { %v149_v43 = vadd.f32 %v366_v28, %v148_v42 }
  0xae   :  { %v127_v44 = vpop.f32.mrf.mxu0 }
  0xaf   :  { %v128_v45 = vadd.f32 %v366_v28, %v127_v44  ;;  %346 = vmatmul.msk.f32.gmra.mxu3 %vm171_vm1, %v149_v43 }
  0xb1   :  { %339 = vmatmul.msk.f32.gmra.mxu1 %vm171_vm1, %v128_v45 }
  0xb4   :  { %v151_v46 = vpop.f32.mrf.mxu2 }
  0xb5   :  { %v152_v47 = vadd.f32 %v366_v28, %v151_v46 }
  0xb6   :  { %v130_v48 = vpop.f32.mrf.mxu0 }
  0xb7   :  { %v131_v49 = vadd.f32 %v366_v28, %v130_v48  ;;  %347 = vmatmul.msk.f32.gmra.mxu3 %vm171_vm1, %v152_v47 }
  0xb9   :  { %340 = vmatmul.msk.f32.gmra.mxu1 %vm171_vm1, %v131_v49 }
  0xbc   :  { %v154_v50 = vpop.f32.mrf.mxu2 }
  0xbd   :  { %v155_v51 = vadd.f32 %v366_v28, %v154_v50 }
  0xbe   :  { %v133_v52 = vpop.f32.mrf.mxu0 }
  0xbf   :  { %v134_v53 = vadd.f32 %v366_v28, %v133_v52  ;;  %348 = vmatmul.msk.f32.gmra.mxu3 %vm171_vm1, %v155_v51 }
  0xc1   :  { %341 = vmatmul.msk.f32.gmra.mxu1 %vm171_vm1, %v134_v53 }
  0xc4   :  { %v157_v54 = vpop.f32.mrf.mxu2 }
  0xc5   :  { %v158_v55 = vadd.f32 %v366_v28, %v157_v54 }
  0xc6   :  { %v136_v56 = vpop.f32.mrf.mxu0 }
  0xc7   :  { %v137_v57 = vadd.f32 %v366_v28, %v136_v56  ;;  %349 = vmatmul.msk.f32.gmra.mxu3 %vm171_vm1, %v158_v55 }
  0xc9   :  { %342 = vmatmul.msk.f32.gmra.mxu1 %vm171_vm1, %v137_v57 }
  0xcc   :  { %v160_v58 = vpop.f32.mrf.mxu2 }
  0xcd   :  { %v161_v59 = vadd.f32 %v366_v28, %v160_v58 }
  0xcf   :  { %350 = vmatmul.msk.f32.gmra.mxu3 %vm171_vm1, %v161_v59 }
  0xd1   :  { %343 = vmatmul.msk.f32.gmra.mxu1 %vm171_vm1, %v140_v60 }
 0x10e   :  { %v237_v62 = vpop.f32.mrf.mxu1 }
 0x10f   :  { %v238_v63 = vadd.f32 %v367_v61, %v237_v62 }
 0x111   :  { %285 = vst [vmem:[#allocation2] sm:$0xff] %v238_v63 }
 0x116   :  { %v240_v0 = vpop.f32.mrf.mxu1 }
 0x117   :  { %v241_v1 = vadd.f32 %v367_v61, %v240_v0 }
 0x119   :  { %286 = vst [vmem:[#allocation2 + $0x8] sm:$0xff] %v241_v1 }
 0x11e   :  { %v243_v2 = vpop.f32.mrf.mxu1 }
 0x11f   :  { %v244_v3 = vadd.f32 %v367_v61, %v243_v2 }
 0x121   :  { %287 = vst [vmem:[#allocation2 + $0x10] sm:$0xff] %v244_v3 }
 0x122   :  { %v264_v4 = vpop.f32.mrf.mxu3 }
 0x123   :  { %v265_v5 = vadd.f32 %v367_v61, %v264_v4 }
 0x125   :  { %294 = vst [vmem:[#allocation2 + $0x48] sm:$0xff] %v265_v5 }
 0x126   :  { %v246_v6 = vpop.f32.mrf.mxu1 }
 0x127   :  { %v247_v7 = vadd.f32 %v367_v61, %v246_v6 }
 0x129   :  { %288 = vst [vmem:[#allocation2 + $0x18] sm:$0xff] %v247_v7 }
 0x12a   :  { %v267_v8 = vpop.f32.mrf.mxu3 }
 0x12b   :  { %v268_v9 = vadd.f32 %v367_v61, %v267_v8 }
 0x12d   :  { %295 = vst [vmem:[#allocation2 + $0x50] sm:$0xff] %v268_v9 }
 0x12e   :  { %v249_v10 = vpop.f32.mrf.mxu1 }
 0x12f   :  { %v250_v11 = vadd.f32 %v367_v61, %v249_v10 }
 0x131   :  { %289 = vst [vmem:[#allocation2 + $0x20] sm:$0xff] %v250_v11 }
 0x132   :  { %v270_v12 = vpop.f32.mrf.mxu3 }
 0x133   :  { %v271_v13 = vadd.f32 %v367_v61, %v270_v12 }
 0x135   :  { %296 = vst [vmem:[#allocation2 + $0x58] sm:$0xff] %v271_v13 }
 0x136   :  { %v252_v14 = vpop.f32.mrf.mxu1 }
 0x137   :  { %v253_v15 = vadd.f32 %v367_v61, %v252_v14 }
 0x139   :  { %290 = vst [vmem:[#allocation2 + $0x28] sm:$0xff] %v253_v15 }
 0x13a   :  { %v273_v16 = vpop.f32.mrf.mxu3 }
 0x13b   :  { %v274_v17 = vadd.f32 %v367_v61, %v273_v16 }
 0x13d   :  { %297 = vst [vmem:[#allocation2 + $0x60] sm:$0xff] %v274_v17 }
 0x13e   :  { %v255_v18 = vpop.f32.mrf.mxu1 }
 0x13f   :  { %v256_v19 = vadd.f32 %v367_v61, %v255_v18 }
 0x141   :  { %291 = vst [vmem:[#allocation2 + $0x30] sm:$0xff] %v256_v19 }
 0x142   :  { %v276_v20 = vpop.f32.mrf.mxu3 }
 0x143   :  { %v277_v21 = vadd.f32 %v367_v61, %v276_v20 }
 0x145   :  { %298 = vst [vmem:[#allocation2 + $0x68] sm:$0xff] %v277_v21 }
 0x146   :  { %v258_v22 = vpop.f32.mrf.mxu1 }
 0x147   :  { %v259_v23 = vadd.f32 %v367_v61, %v258_v22 }
 0x149   :  { %292 = vst [vmem:[#allocation2 + $0x38] sm:$0xff] %v259_v23 }
 0x14a   :  { %v279_v24 = vpop.f32.mrf.mxu3 }
 0x14b   :  { %v280_v25 = vadd.f32 %v367_v61, %v279_v24 }
 0x14d   :  { %299 = vst [vmem:[#allocation2 + $0x70] sm:$0xff] %v280_v25 }
 0x14e   :  { %v261_v26 = vpop.f32.mrf.mxu1 }
 0x14f   :  { %v262_v27 = vadd.f32 %v367_v61, %v261_v26 }
 0x151   :  { %293 = vst [vmem:[#allocation2 + $0x40] sm:$0xff] %v262_v27 }
 0x152   :  { %v282_v28 = vpop.f32.mrf.mxu3 }
 0x153   :  { %v283_v29 = vadd.f32 %v367_v61, %v282_v28 }
 0x155   :  { %300 = vst [vmem:[#allocation2 + $0x78] sm:$0xff] %v283_v29 }
 0x156   :  { %313 = dma.vmem_to_hbm [thread:$0]  %s306_s4, 2048, %s308_s26, [#allocation3], %s395_s27, %s395_s27, %s396_s28  }
 0x157   :  { %392 = dma.done.wait [#allocation3], 2048  }
 0x158   :  { %393 = vsyncadd [#allocation3], 4294965248 }
 0x159   :  { %318 = vsyncpa [#allocation3], 1 }

</bundles_post_ra>
